<compile_context>
chip_gen: v7x
topology: tpu7x:2x2x1
jax: 0.10.0
libtpu: 0.0.40
codegen_flags: <defaults>
</compile_context>

<pallas_src>
import functools

import jax
import jax.numpy as jnp
import numpy as np
from jax import lax
from jax.experimental import pallas as pl
from jax.experimental.pallas import tpu as pltpu

_EPS = 1e-6  # F.pairwise_distance default eps (added to the elementwise difference)


# --------------------------------------------------------------------------- #
# Kernel
# --------------------------------------------------------------------------- #
def _gaussian_paired_kernel(za_ref, zb_ref, zah_ref, zbh_ref,
                            sdii_ref, sqii_ref, sqij_ref,
                            *, gamma, tm, nbc, nb_total, valid_rows):
    """One grid step = one paired row tile.

    za_ref : (TM, D)  rows [g*TM,(g+1)*TM) of the first half of z
    zb_ref : (TM, D)  the same rows of the second half of z
    zah_ref: (sub, D) head of the *next* first-half tile  (wraps to tile 0)
    zbh_ref: (sub, D) head of the *next* second-half tile (wraps to tile 0)
    Outputs are per-core (1,1,1) resident accumulators: sum d_ii, sum qii, sum qij.
    """
    c = pl.program_id(0)
    t = pl.program_id(1)
    g = c * nbc + t                       # global row-tile index in [0, nb_total)

    @pl.when(t == 0)
    def _init():
        sdii_ref[...] = jnp.zeros_like(sdii_ref)
        sqii_ref[...] = jnp.zeros_like(sqii_ref)
        sqij_ref[...] = jnp.zeros_like(sqij_ref)

    za = za_ref[...].astype(jnp.float32)
    zb = zb_ref[...].astype(jnp.float32)
    za_next0 = zah_ref[0:1, :].astype(jnp.float32)       # (1, D)
    zb_next0 = zbh_ref[0:1, :].astype(jnp.float32)       # (1, D)

    # ---- d_ii : first-half rows use (za - zb + eps), second-half (zb - za + eps)
    da = za - zb + _EPS
    d_ii_a = jnp.sum(da * da, axis=-1, keepdims=True)    # (TM, 1)
    db = zb - za + _EPS
    d_ii_b = jnp.sum(db * db, axis=-1, keepdims=True)

    # ---- d_ij : neighbour of row r is the (r+1)-th row of the *other* half ----
    zb_roll = pltpu.roll(zb, shift=tm - 1, axis=0)       # row r <- zb[(r+1) % TM]
    za_roll = pltpu.roll(za, shift=tm - 1, axis=0)
    ea = za - zb_roll + _EPS
    d_ij_a = jnp.sum(ea * ea, axis=-1, keepdims=True)
    eb = zb - za_roll + _EPS
    d_ij_b = jnp.sum(eb * eb, axis=-1, keepdims=True)

    # Tile-last-row fix-up, done after the lane reduction: (1,D) diffs and a
    # (TM,1) select instead of a full-tile where.  At the global last tile the
    # wrap neighbours swap halves (row B-1 -> z[0], row 2B-1 -> z[B]).
    is_last_tile = g == (nb_total - 1)
    nbr_a = jnp.where(is_last_tile, za_next0, zb_next0)
    nbr_b = jnp.where(is_last_tile, zb_next0, za_next0)
    fa = za[tm - 1:tm, :] - nbr_a + _EPS
    d_ij_a_last = jnp.sum(fa * fa, axis=-1, keepdims=True)   # (1, 1)
    fb = zb[tm - 1:tm, :] - nbr_b + _EPS
    d_ij_b_last = jnp.sum(fb * fb, axis=-1, keepdims=True)

    row = lax.broadcasted_iota(jnp.int32, (tm, 1), 0)
    last_row = row == tm - 1
    d_ij_a = jnp.where(last_row, d_ij_a_last, d_ij_a)
    d_ij_b = jnp.where(last_row, d_ij_b_last, d_ij_b)

    # NOTE: exp(+gamma * d) mirrors the torch code exactly ("bug-compatible");
    # it can overflow f32 for large distances, just like the reference.
    d_sum = d_ii_a + d_ii_b
    qii = jnp.exp(gamma * d_ii_a) + jnp.exp(gamma * d_ii_b)
    qij = -(jnp.exp(gamma * d_ij_a) + jnp.exp(gamma * d_ij_b))

    if valid_rows is not None:            # padded batch: drop padding rows
        valid = (g * tm + row) < valid_rows
        d_sum = jnp.where(valid, d_sum, 0.0)
        qii = jnp.where(valid, qii, 0.0)
        qij = jnp.where(valid, qij, 0.0)

    sdii_ref[...] += jnp.sum(d_sum).reshape(1, 1, 1)
    sqii_ref[...] += jnp.sum(qii).reshape(1, 1, 1)
    sqij_ref[...] += jnp.sum(qij).reshape(1, 1, 1)


# --------------------------------------------------------------------------- #
# Wrapper
# --------------------------------------------------------------------------- #
def _choose_row_tile(bp, d, itemsize, sub, max_rows=None):
    """Largest sublane-aligned divisor of bp under a per-stream block budget."""
    # ~2 MiB of f32-equivalent rows per (TM, D) stream block: big enough to
    # amortise per-step pipeline overhead, small enough that the two
    # double-buffered streams + in-kernel f32 temporaries fit every generation.
    cap = (2 * 1024 * 1024) // (d * 4)
    if max_rows is not None:
        cap = min(cap, int(max_rows))
    cap = min(cap, bp)
    cap = max(sub, (cap // sub) * sub)

    best = sub
    best_even = 0
    for t in range(sub, cap + 1, sub):
        if bp % t == 0:
            best = t
            if (bp // t) % 2 == 0:
                best_even = t
    # Prefer an even number of row tiles (so the grid can split across the two
    # TensorCores of a v7x chip) unless that would shrink the tile too much.
    if best_even >= max(sub, best // 2):
        return best_even
    return best


@functools.partial(jax.jit, static_argnames=("gamma", "max_tile_rows"))
def _pairwise_sums(z, *, gamma, max_tile_rows=None):
    """Returns (sum d_ii, sum qii, sum qij) as device f32 scalars."""
    two_b, d = z.shape
    if two_b % 2 != 0:
        # TODO(synk): an odd row count (mismatched views) has no clean paired-tile
        # mapping; the reference module always receives 2*B rows.
        raise ValueError("GaussianLoss expects an even number of rows (2*B).")
    b = two_b // 2
    itemsize = z.dtype.itemsize
    sub = {4: 8, 2: 16, 1: 32}.get(itemsize, 8)

    # Pad each half to the sublane granule; seed the first pad row of each half
    # with the row the global roll(z2, -1) wraps to, so the in-kernel +1 shift
    # stays correct for the last *valid* row of each half.
    bp = max(sub, ((b + sub - 1) // sub) * sub)
    if bp != b:
        pad = bp - b
        pad_a = jnp.zeros((pad, d), z.dtype).at[0, :].set(z[b, :])   # neighbour of row 2B-1
        pad_b = jnp.zeros((pad, d), z.dtype).at[0, :].set(z[0, :])   # neighbour of row B-1
        zp = jnp.concatenate([z[:b], pad_a, z[b:], pad_b], axis=0)
        valid_rows = b
    else:
        zp = z
        valid_rows = None

    tm = _choose_row_tile(bp, d, itemsize, sub, max_tile_rows)
    nb_total = bp // tm                          # number of paired row tiles
    n_cores = 2 if (nb_total >= 2 and nb_total % 2 == 0) else 1
    nbc = nb_total // n_cores
    tmb = tm // sub

    kernel = functools.partial(
        _gaussian_paired_kernel, gamma=float(gamma), tm=tm, nbc=nbc,
        nb_total=nb_total, valid_rows=valid_rows)

    # zp has 2*bp rows = 2*nb_total blocks of TM rows (= 2*nb_total*tmb of sub rows).
    za_map = lambda c, t: (c * nbc + t, 0)                                    # first half
    zb_map = lambda c, t: (nb_total + c * nbc + t, 0)                         # second half
    zah_map = lambda c, t: (((c * nbc + t + 1) % nb_total) * tmb, 0)          # next za head
    zbh_map = lambda c, t: ((nb_total + (c * nbc + t + 1) % nb_total) * tmb, 0)  # next zb head

    grid_spec = pltpu.PrefetchScalarGridSpec(
        num_scalar_prefetch=0,
        grid=(n_cores, nbc),
        in_specs=[
            pl.BlockSpec((tm, d), za_map),
            pl.BlockSpec((tm, d), zb_map),
            pl.BlockSpec((sub, d), zah_map),
            pl.BlockSpec((sub, d), zbh_map),
        ],
        out_specs=(pl.BlockSpec((1, 1, 1), lambda c, t: (c, 0, 0)),) * 3,
    )
    out_shape = (jax.ShapeDtypeStruct((n_cores, 1, 1), jnp.float32),) * 3

    sdii, sqii, sqij = pl.pallas_call(
        kernel,
        out_shape=out_shape,
        grid_spec=grid_spec,
        compiler_params=pltpu.CompilerParams(
            dimension_semantics=("parallel", "arbitrary"),
            vmem_limit_bytes=48 * 1024 * 1024),
    )(zp, zp, zp, zp)

    return (jnp.sum(sdii[:, 0, 0]),
            jnp.sum(sqii[:, 0, 0]),
            jnp.sum(sqij[:, 0, 0]))


@functools.partial(jax.jit, static_argnames=("gamma", "n", "alpha", "rho", "two_b"))
def _finalize_update(sum_dii, sum_qii, sum_qij, s_inv, *, gamma, n, alpha, rho, two_b):
    """Loss assembly + SCEBase.update_s bookkeeping, entirely on device."""
    n2 = n * n
    z_hat = s_inv / n2
    loss = (-gamma * sum_dii + sum_qij / z_hat) / two_b
    # update_s (no-grad scalar bookkeeping)
    xi = alpha * sum_qii + (1.0 - alpha) * sum_qij
    omega = alpha * two_b + (1.0 - alpha) * two_b              # == 2B
    momentum = n / (n + omega * 0.01) if rho < 0 else rho      # static scalar
    new_s_inv = momentum * s_inv + (1.0 - momentum) * n2 * (xi / omega)
    return loss, new_s_inv, xi, jnp.float32(omega)


class GaussianLoss:
    """JAX / Pallas port of criterions.scelosses.GaussianLoss (forward + update_s)."""

    def __init__(self, N=60000, rho=-1, alpha=0.5, S_init=2.0, tile_rows=None):
        self.N = float(N)
        self.rho = float(rho)
        self.alpha = float(alpha)
        var = 0.5
        self.gamma = 1.0 / (2.0 * var)
        self.tile_rows = tile_rows            # optional cap, mainly for testing
        # SCEBase buffers, kept as device scalars (no per-step host sync).
        self.s_inv = jnp.float32(float(N) ** S_init)
        self.xi = jnp.float32(0.0)
        self.omega = jnp.float32(0.0)

    def forward(self, z):
        z = jnp.asarray(z)                    # keep the caller's dtype (bf16 stays bf16)
        two_b = z.shape[0]
        sum_dii, sum_qii, sum_qij = _pairwise_sums(
            z, gamma=self.gamma, max_tile_rows=self.tile_rows)
        loss, self.s_inv, self.xi, self.omega = _finalize_update(
            sum_dii, sum_qii, sum_qij, self.s_inv,
            gamma=self.gamma, n=self.N, alpha=self.alpha, rho=self.rho,
            two_b=float(two_b))
        return loss

    __call__ = forward


# --------------------------------------------------------------------------- #
# Pure-JAX reference (literal port of the torch forward + update_s)
# --------------------------------------------------------------------------- #
def _reference_forward(z, gamma, s_inv, n, alpha, rho):
    z = jnp.asarray(z, jnp.float32)
    two_b = z.shape[0]
    b = two_b // 2
    z1 = jnp.concatenate([z[:b], z[b:]], axis=0)
    z2 = jnp.concatenate([z[b:], z[:b]], axis=0)
    d_ii = jnp.sqrt(jnp.sum((z1 - z2 + _EPS) ** 2, axis=-1)) ** 2
    d_ij = jnp.sqrt(jnp.sum((z1 - jnp.roll(z2, -1, axis=0) + _EPS) ** 2, axis=-1)) ** 2
    qii = jnp.exp(d_ii * gamma)
    qij = -jnp.exp(d_ij * gamma)
    z_hat = s_inv / (n * n)
    loss = jnp.mean(-d_ii * gamma) + jnp.mean(qij / z_hat)
    xi = alpha * jnp.sum(qii) + (1.0 - alpha) * jnp.sum(qij)
    omega = alpha * two_b + (1.0 - alpha) * two_b
    momentum = n / (n + omega * 0.01) if rho < 0 else rho
    new_s_inv = momentum * s_inv + (1.0 - momentum) * (n * n) * (xi / omega)
    return loss, new_s_inv


if __name__ == "__main__":
    key = jax.random.PRNGKey(0)
    ks = jax.random.split(key, 5)

    def check(mod, z, rtol=1e-4, atol=1e-5):
        s0 = float(mod.s_inv)
        loss = jax.block_until_ready(mod(z))
        ref_loss, ref_s = _reference_forward(z, mod.gamma, s0, mod.N, mod.alpha, mod.rho)
        np.testing.assert_allclose(np.asarray(loss), np.asarray(ref_loss), rtol=rtol, atol=atol)
        np.testing.assert_allclose(np.asarray(mod.s_inv), np.asarray(ref_s), rtol=1e-5)

    # 1) sublane-aligned single paired tile, lane-dense D
    check(GaussianLoss(), 0.1 * jax.random.normal(ks[0], (16, 128), jnp.float32))
    # 2) padded path (B not sublane-aligned), small D
    check(GaussianLoss(), 0.1 * jax.random.normal(ks[1], (12, 32), jnp.float32))
    # 3) multi-tile + 2-way parallel grid split + boundary-row head streams
    check(GaussianLoss(tile_rows=8), 0.1 * jax.random.normal(ks[2], (64, 128), jnp.float32))
    # 4) padded + multi-tile (wrap neighbour comes from the seeded pad rows)
    check(GaussianLoss(tile_rows=8), 0.1 * jax.random.normal(ks[3], (24, 128), jnp.float32))
    # 5) bf16 input kept bf16 in HBM, f32 math in-kernel
    check(GaussianLoss(),
          (0.1 * jax.random.normal(ks[4], (32, 128), jnp.float32)).astype(jnp.bfloat16),
          rtol=1e-3, atol=1e-4)

    print("KERNEL_OK")
</pallas_src>

<mosaic_0001>
module attributes {stable_mosaic.version = 11 : i64} {
  func.func @_gaussian_paired_kernel(%arg0: i32, %arg1: i32, %arg2: memref<8x128xf32, #tpu.memory_space<vmem>>, %arg3: memref<8x128xf32, #tpu.memory_space<vmem>>, %arg4: memref<8x128xf32, #tpu.memory_space<vmem>>, %arg5: memref<8x128xf32, #tpu.memory_space<vmem>>, %arg6: memref<1x1x1xf32, #tpu.memory_space<vmem>>, %arg7: memref<1x1x1xf32, #tpu.memory_space<vmem>>, %arg8: memref<1x1x1xf32, #tpu.memory_space<vmem>>) attributes {dimension_semantics = [#tpu.dimension_semantics<parallel>, #tpu.dimension_semantics<arbitrary>], iteration_bounds = array<i64: 1, 1>, scalar_prefetch = 0 : i64, scratch_operands = 0 : i64, tpu.core_type = #tpu.core_type<tc>, window_params = [{transform_indices = @transform_0, window_bounds = array<i64: 8, 128>}, {transform_indices = @transform_1, window_bounds = array<i64: 8, 128>}, {transform_indices = @transform_2, window_bounds = array<i64: 8, 128>}, {transform_indices = @transform_3, window_bounds = array<i64: 8, 128>}, {transform_indices = @transform_4, window_bounds = array<i64: 1, 1, 1>}, {transform_indices = @transform_5, window_bounds = array<i64: 1, 1, 1>}, {transform_indices = @transform_6, window_bounds = array<i64: 1, 1, 1>}]} {
    %c1_i32 = arith.constant 1 : i32
    %0 = arith.muli %arg0, %c1_i32 : i32
    %1 = arith.addi %0, %arg1 : i32
    %c0_i32 = arith.constant 0 : i32
    %2 = arith.cmpi eq, %arg1, %c0_i32 : i32
    %3 = arith.extui %2 : i1 to i32
    %c0_i32_0 = arith.constant 0 : i32
    %4 = arith.cmpi ne, %3, %c0_i32_0 : i32
    scf.if %4 {
      %cst_48 = arith.constant 0.000000e+00 : f32
      %102 = vector.broadcast %cst_48 : f32 to vector<1x1x1xf32>
      %c0_49 = arith.constant 0 : index
      %c0_50 = arith.constant 0 : index
      %c0_51 = arith.constant 0 : index
      %103 = vector.load %arg6[%c0_49, %c0_50, %c0_51] : memref<1x1x1xf32, #tpu.memory_space<vmem>>, vector<1x1x1xf32>
      tpu.vector_store %arg6[%c0_49, %c0_50, %c0_51], %102 {strides = array<i32>} : memref<1x1x1xf32, #tpu.memory_space<vmem>>, vector<1x1x1xf32>,
      %cst_52 = arith.constant 0.000000e+00 : f32
      %104 = vector.broadcast %cst_52 : f32 to vector<1x1x1xf32>
      %c0_53 = arith.constant 0 : index
      %c0_54 = arith.constant 0 : index
      %c0_55 = arith.constant 0 : index
      %105 = vector.load %arg7[%c0_53, %c0_54, %c0_55] : memref<1x1x1xf32, #tpu.memory_space<vmem>>, vector<1x1x1xf32>
      tpu.vector_store %arg7[%c0_53, %c0_54, %c0_55], %104 {strides = array<i32>} : memref<1x1x1xf32, #tpu.memory_space<vmem>>, vector<1x1x1xf32>,
      %cst_56 = arith.constant 0.000000e+00 : f32
      %106 = vector.broadcast %cst_56 : f32 to vector<1x1x1xf32>
      %c0_57 = arith.constant 0 : index
      %c0_58 = arith.constant 0 : index
      %c0_59 = arith.constant 0 : index
      %107 = vector.load %arg8[%c0_57, %c0_58, %c0_59] : memref<1x1x1xf32, #tpu.memory_space<vmem>>, vector<1x1x1xf32>
      tpu.vector_store %arg8[%c0_57, %c0_58, %c0_59], %106 {strides = array<i32>} : memref<1x1x1xf32, #tpu.memory_space<vmem>>, vector<1x1x1xf32>,
    } else {
    }
    %c0 = arith.constant 0 : index
    %c0_1 = arith.constant 0 : index
    %5 = vector.load %arg2[%c0, %c0_1] : memref<8x128xf32, #tpu.memory_space<vmem>>, vector<8x128xf32>
    %c0_2 = arith.constant 0 : index
    %c0_3 = arith.constant 0 : index
    %6 = vector.load %arg3[%c0_2, %c0_3] : memref<8x128xf32, #tpu.memory_space<vmem>>, vector<8x128xf32>
    %c0_4 = arith.constant 0 : index
    %c0_5 = arith.constant 0 : index
    %7 = vector.load %arg4[%c0_4, %c0_5] : memref<8x128xf32, #tpu.memory_space<vmem>>, vector<1x128xf32>
    %c0_6 = arith.constant 0 : index
    %c0_7 = arith.constant 0 : index
    %8 = vector.load %arg5[%c0_6, %c0_7] : memref<8x128xf32, #tpu.memory_space<vmem>>, vector<1x128xf32>
    %9 = arith.subf %5, %6 : vector<8x128xf32>
    %cst = arith.constant 9.99999997E-7 : f32
    %10 = vector.broadcast %cst : f32 to vector<8x128xf32>
    %11 = arith.addf %9, %10 : vector<8x128xf32>
    %12 = arith.mulf %11, %11 : vector<8x128xf32>
    %cst_8 = arith.constant dense<0.000000e+00> : vector<8xf32>
    %13 = vector.multi_reduction <add>, %12, %cst_8 [1] : vector<8x128xf32> to vector<8xf32>
    %14 = vector.shape_cast %13 : vector<8xf32> to vector<8x1xf32>
    %15 = arith.subf %6, %5 : vector<8x128xf32>
    %cst_9 = arith.constant 9.99999997E-7 : f32
    %16 = vector.broadcast %cst_9 : f32 to vector<8x128xf32>
    %17 = arith.addf %15, %16 : vector<8x128xf32>
    %18 = arith.mulf %17, %17 : vector<8x128xf32>
    %cst_10 = arith.constant dense<0.000000e+00> : vector<8xf32>
    %19 = vector.multi_reduction <add>, %18, %cst_10 [1] : vector<8x128xf32> to vector<8xf32>
    %20 = vector.shape_cast %19 : vector<8xf32> to vector<8x1xf32>
    %c7_i32 = arith.constant 7 : i32
    %21 = tpu.dynamic_rotate %6 by %c7_i32 dim 0 : vector<8x128xf32>, i32 -> vector<8x128xf32>
    %c7_i32_11 = arith.constant 7 : i32
    %22 = tpu.dynamic_rotate %5 by %c7_i32_11 dim 0 : vector<8x128xf32>, i32 -> vector<8x128xf32>
    %23 = arith.subf %5, %21 : vector<8x128xf32>
    %cst_12 = arith.constant 9.99999997E-7 : f32
    %24 = vector.broadcast %cst_12 : f32 to vector<8x128xf32>
    %25 = arith.addf %23, %24 : vector<8x128xf32>
    %26 = arith.mulf %25, %25 : vector<8x128xf32>
    %cst_13 = arith.constant dense<0.000000e+00> : vector<8xf32>
    %27 = vector.multi_reduction <add>, %26, %cst_13 [1] : vector<8x128xf32> to vector<8xf32>
    %28 = vector.shape_cast %27 : vector<8xf32> to vector<8x1xf32>
    %29 = arith.subf %6, %22 : vector<8x128xf32>
    %cst_14 = arith.constant 9.99999997E-7 : f32
    %30 = vector.broadcast %cst_14 : f32 to vector<8x128xf32>
    %31 = arith.addf %29, %30 : vector<8x128xf32>
    %32 = arith.mulf %31, %31 : vector<8x128xf32>
    %cst_15 = arith.constant dense<0.000000e+00> : vector<8xf32>
    %33 = vector.multi_reduction <add>, %32, %cst_15 [1] : vector<8x128xf32> to vector<8xf32>
    %34 = vector.shape_cast %33 : vector<8xf32> to vector<8x1xf32>
    %c0_i32_16 = arith.constant 0 : i32
    %35 = arith.cmpi eq, %1, %c0_i32_16 : i32
    %36 = arith.select %35, %7, %8 : vector<1x128xf32>
    %37 = arith.select %35, %8, %7 : vector<1x128xf32>
    %38 = vector.extract_strided_slice %5 {offsets = [7, 0], sizes = [1, 128], strides = [1, 1]} : vector<8x128xf32> to vector<1x128xf32>
    %39 = arith.subf %38, %36 : vector<1x128xf32>
    %cst_17 = arith.constant 9.99999997E-7 : f32
    %40 = vector.broadcast %cst_17 : f32 to vector<1x128xf32>
    %41 = arith.addf %39, %40 : vector<1x128xf32>
    %42 = arith.mulf %41, %41 : vector<1x128xf32>
    %cst_18 = arith.constant dense<0.000000e+00> : vector<1xf32>
    %43 = vector.multi_reduction <add>, %42, %cst_18 [1] : vector<1x128xf32> to vector<1xf32>
    %44 = vector.shape_cast %43 : vector<1xf32> to vector<1x1xf32>
    %45 = vector.extract_strided_slice %6 {offsets = [7, 0], sizes = [1, 128], strides = [1, 1]} : vector<8x128xf32> to vector<1x128xf32>
    %46 = arith.subf %45, %37 : vector<1x128xf32>
    %cst_19 = arith.constant 9.99999997E-7 : f32
    %47 = vector.broadcast %cst_19 : f32 to vector<1x128xf32>
    %48 = arith.addf %46, %47 : vector<1x128xf32>
    %49 = arith.mulf %48, %48 : vector<1x128xf32>
    %cst_20 = arith.constant dense<0.000000e+00> : vector<1xf32>
    %50 = vector.multi_reduction <add>, %49, %cst_20 [1] : vector<1x128xf32> to vector<1xf32>
    %51 = vector.shape_cast %50 : vector<1xf32> to vector<1x1xf32>
    %52 = tpu.iota {dimensions = array<i32: 0>} : vector<8x1xi32>
    %c7_i32_21 = arith.constant 7 : i32
    %53 = vector.broadcast %c7_i32_21 : i32 to vector<8x1xi32>
    %54 = arith.cmpi eq, %52, %53 : vector<8x1xi32>
    %55 = vector.shape_cast %44 : vector<1x1xf32> to vector<1x1xf32>
    %56 = vector.broadcast %55 : vector<1x1xf32> to vector<8x1xf32>
    %57 = arith.select %54, %56, %28 : vector<8x1xi1>, vector<8x1xf32>
    %58 = vector.shape_cast %51 : vector<1x1xf32> to vector<1x1xf32>
    %59 = vector.broadcast %58 : vector<1x1xf32> to vector<8x1xf32>
    %60 = arith.select %54, %59, %34 : vector<8x1xi1>, vector<8x1xf32>
    %61 = arith.addf %14, %20 : vector<8x1xf32>
    %cst_22 = arith.constant 1.000000e+00 : f32
    %62 = vector.broadcast %cst_22 : f32 to vector<8x1xf32>
    %63 = arith.mulf %62, %14 : vector<8x1xf32>
    %64 = math.exp %63 : vector<8x1xf32>
    %cst_23 = arith.constant 1.000000e+00 : f32
    %65 = vector.broadcast %cst_23 : f32 to vector<8x1xf32>
    %66 = arith.mulf %65, %20 : vector<8x1xf32>
    %67 = math.exp %66 : vector<8x1xf32>
    %68 = arith.addf %64, %67 : vector<8x1xf32>
    %cst_24 = arith.constant 1.000000e+00 : f32
    %69 = vector.broadcast %cst_24 : f32 to vector<8x1xf32>
    %70 = arith.mulf %69, %57 : vector<8x1xf32>
    %71 = math.exp %70 : vector<8x1xf32>
    %cst_25 = arith.constant 1.000000e+00 : f32
    %72 = vector.broadcast %cst_25 : f32 to vector<8x1xf32>
    %73 = arith.mulf %72, %60 : vector<8x1xf32>
    %74 = math.exp %73 : vector<8x1xf32>
    %75 = arith.addf %71, %74 : vector<8x1xf32>
    %cst_26 = arith.constant 0.000000e+00 : f32
    %76 = vector.broadcast %cst_26 : f32 to vector<8x1xf32>
    %77 = arith.subf %76, %75 : vector<8x1xf32>
    %c0_27 = arith.constant 0 : index
    %c0_28 = arith.constant 0 : index
    %c0_29 = arith.constant 0 : index
    %78 = vector.load %arg6[%c0_27, %c0_28, %c0_29] : memref<1x1x1xf32, #tpu.memory_space<vmem>>, vector<1x1x1xf32>
    %79 = vector.shape_cast %61 : vector<8x1xf32> to vector<1x8x1xf32>
    %cst_30 = arith.constant dense<0.000000e+00> : vector<1xf32>
    %80 = vector.multi_reduction <add>, %79, %cst_30 [1, 2] : vector<1x8x1xf32> to vector<1xf32>
    %81 = vector.shape_cast %80 : vector<1xf32> to vector<1x1x1xf32>
    %82 = vector.extract %81[0, 0, 0] : f32 from vector<1x1x1xf32>
    %83 = vector.broadcast %82 : f32 to vector<1x1x1xf32>
    %84 = arith.addf %78, %83 : vector<1x1x1xf32>
    %c0_31 = arith.constant 0 : index
    %c0_32 = arith.constant 0 : index
    %c0_33 = arith.constant 0 : index
    %85 = vector.load %arg6[%c0_31, %c0_32, %c0_33] : memref<1x1x1xf32, #tpu.memory_space<vmem>>, vector<1x1x1xf32>
    tpu.vector_store %arg6[%c0_31, %c0_32, %c0_33], %84 {strides = array<i32>} : memref<1x1x1xf32, #tpu.memory_space<vmem>>, vector<1x1x1xf32>,
    %c0_34 = arith.constant 0 : index
    %c0_35 = arith.constant 0 : index
    %c0_36 = arith.constant 0 : index
    %86 = vector.load %arg7[%c0_34, %c0_35, %c0_36] : memref<1x1x1xf32, #tpu.memory_space<vmem>>, vector<1x1x1xf32>
    %87 = vector.shape_cast %68 : vector<8x1xf32> to vector<1x8x1xf32>
    %cst_37 = arith.constant dense<0.000000e+00> : vector<1xf32>
    %88 = vector.multi_reduction <add>, %87, %cst_37 [1, 2] : vector<1x8x1xf32> to vector<1xf32>
    %89 = vector.shape_cast %88 : vector<1xf32> to vector<1x1x1xf32>
    %90 = vector.extract %89[0, 0, 0] : f32 from vector<1x1x1xf32>
    %91 = vector.broadcast %90 : f32 to vector<1x1x1xf32>
    %92 = arith.addf %86, %91 : vector<1x1x1xf32>
    %c0_38 = arith.constant 0 : index
    %c0_39 = arith.constant 0 : index
    %c0_40 = arith.constant 0 : index
    %93 = vector.load %arg7[%c0_38, %c0_39, %c0_40] : memref<1x1x1xf32, #tpu.memory_space<vmem>>, vector<1x1x1xf32>
    tpu.vector_store %arg7[%c0_38, %c0_39, %c0_40], %92 {strides = array<i32>} : memref<1x1x1xf32, #tpu.memory_space<vmem>>, vector<1x1x1xf32>,
    %c0_41 = arith.constant 0 : index
    %c0_42 = arith.constant 0 : index
    %c0_43 = arith.constant 0 : index
    %94 = vector.load %arg8[%c0_41, %c0_42, %c0_43] : memref<1x1x1xf32, #tpu.memory_space<vmem>>, vector<1x1x1xf32>
    %95 = vector.shape_cast %77 : vector<8x1xf32> to vector<1x8x1xf32>
    %cst_44 = arith.constant dense<0.000000e+00> : vector<1xf32>
    %96 = vector.multi_reduction <add>, %95, %cst_44 [1, 2] : vector<1x8x1xf32> to vector<1xf32>
    %97 = vector.shape_cast %96 : vector<1xf32> to vector<1x1x1xf32>
    %98 = vector.extract %97[0, 0, 0] : f32 from vector<1x1x1xf32>
    %99 = vector.broadcast %98 : f32 to vector<1x1x1xf32>
    %100 = arith.addf %94, %99 : vector<1x1x1xf32>
    %c0_45 = arith.constant 0 : index
    %c0_46 = arith.constant 0 : index
    %c0_47 = arith.constant 0 : index
    %101 = vector.load %arg8[%c0_45, %c0_46, %c0_47] : memref<1x1x1xf32, #tpu.memory_space<vmem>>, vector<1x1x1xf32>
    tpu.vector_store %arg8[%c0_45, %c0_46, %c0_47], %100 {strides = array<i32>} : memref<1x1x1xf32, #tpu.memory_space<vmem>>, vector<1x1x1xf32>,
    return
  }
  func.func @transform_0(%arg0: i32, %arg1: i32) -> (i32, i32) {
    %c1_i32 = arith.constant 1 : i32
    %0 = arith.muli %arg0, %c1_i32 : i32
    %1 = arith.addi %0, %arg1 : i32
    %c0_i32 = arith.constant 0 : i32
    %c0_i32_0 = arith.constant 0 : i32
    return %1, %c0_i32 : i32, i32
  }
  func.func @transform_1(%arg0: i32, %arg1: i32) -> (i32, i32) {
    %c1_i32 = arith.constant 1 : i32
    %0 = arith.muli %arg0, %c1_i32 : i32
    %c1_i32_0 = arith.constant 1 : i32
    %1 = arith.addi %c1_i32_0, %0 : i32
    %2 = arith.addi %1, %arg1 : i32
    %c0_i32 = arith.constant 0 : i32
    %c0_i32_1 = arith.constant 0 : i32
    return %2, %c0_i32 : i32, i32
  }
  func.func @transform_2(%arg0: i32, %arg1: i32) -> (i32, i32) {
    %c1_i32 = arith.constant 1 : i32
    %0 = arith.muli %arg0, %c1_i32 : i32
    %1 = arith.addi %0, %arg1 : i32
    %c1_i32_0 = arith.constant 1 : i32
    %2 = arith.addi %1, %c1_i32_0 : i32
    %c1_i32_1 = arith.constant 1 : i32
    %c0_i32 = arith.constant 0 : i32
    %3 = arith.cmpi eq, %c1_i32_1, %c0_i32 : i32
    %c1_i32_2 = arith.constant 1 : i32
    %4 = arith.select %3, %c1_i32_2, %c1_i32_1 : i32
    %5 = arith.remsi %2, %4 : i32
    %c0_i32_3 = arith.constant 0 : i32
    %6 = arith.cmpi ne, %5, %c0_i32_3 : i32
    %c0_i32_4 = arith.constant 0 : i32
    %7 = arith.cmpi slt, %5, %c0_i32_4 : i32
    %c0_i32_5 = arith.constant 0 : i32
    %8 = arith.cmpi slt, %4, %c0_i32_5 : i32
    %9 = arith.xori %7, %8 : i1
    %10 = arith.andi %9, %6 : i1
    %11 = arith.addi %5, %4 : i32
    %12 = arith.select %10, %11, %5 : i32
    %c1_i32_6 = arith.constant 1 : i32
    %13 = arith.muli %12, %c1_i32_6 : i32
    %c0_i32_7 = arith.constant 0 : i32
    %c0_i32_8 = arith.constant 0 : i32
    return %13, %c0_i32_7 : i32, i32
  }
  func.func @transform_3(%arg0: i32, %arg1: i32) -> (i32, i32) {
    %c1_i32 = arith.constant 1 : i32
    %0 = arith.muli %arg0, %c1_i32 : i32
    %1 = arith.addi %0, %arg1 : i32
    %c1_i32_0 = arith.constant 1 : i32
    %2 = arith.addi %1, %c1_i32_0 : i32
    %c1_i32_1 = arith.constant 1 : i32
    %c0_i32 = arith.constant 0 : i32
    %3 = arith.cmpi eq, %c1_i32_1, %c0_i32 : i32
    %c1_i32_2 = arith.constant 1 : i32
    %4 = arith.select %3, %c1_i32_2, %c1_i32_1 : i32
    %5 = arith.remsi %2, %4 : i32
    %c0_i32_3 = arith.constant 0 : i32
    %6 = arith.cmpi ne, %5, %c0_i32_3 : i32
    %c0_i32_4 = arith.constant 0 : i32
    %7 = arith.cmpi slt, %5, %c0_i32_4 : i32
    %c0_i32_5 = arith.constant 0 : i32
    %8 = arith.cmpi slt, %4, %c0_i32_5 : i32
    %9 = arith.xori %7, %8 : i1
    %10 = arith.andi %9, %6 : i1
    %11 = arith.addi %5, %4 : i32
    %12 = arith.select %10, %11, %5 : i32
    %c1_i32_6 = arith.constant 1 : i32
    %13 = arith.addi %c1_i32_6, %12 : i32
    %c1_i32_7 = arith.constant 1 : i32
    %14 = arith.muli %13, %c1_i32_7 : i32
    %c0_i32_8 = arith.constant 0 : i32
    %c0_i32_9 = arith.constant 0 : i32
    return %14, %c0_i32_8 : i32, i32
  }
  func.func @transform_4(%arg0: i32, %arg1: i32) -> (i32, i32, i32) {
    %c0_i32 = arith.constant 0 : i32
    %c0_i32_0 = arith.constant 0 : i32
    %c0_i32_1 = arith.constant 0 : i32
    return %arg0, %c0_i32, %c0_i32_0 : i32, i32, i32
  }
  func.func @transform_5(%arg0: i32, %arg1: i32) -> (i32, i32, i32) {
    %c0_i32 = arith.constant 0 : i32
    %c0_i32_0 = arith.constant 0 : i32
    %c0_i32_1 = arith.constant 0 : i32
    return %arg0, %c0_i32, %c0_i32_0 : i32, i32, i32
  }
  func.func @transform_6(%arg0: i32, %arg1: i32) -> (i32, i32, i32) {
    %c0_i32 = arith.constant 0 : i32
    %c0_i32_0 = arith.constant 0 : i32
    %c0_i32_1 = arith.constant 0 : i32
    return %arg0, %c0_i32, %c0_i32_0 : i32, i32, i32
  }
}

</mosaic_0001>

<bundles_post_ra>
// kernel: _pairwise_sums.1
= control target key start
LH: loop header
LB: loop body
LE: loop exit
PB: predicated region body
PF: predicated region fallthrough
CT: control target
= control target key end

     0   :  { %12 = vsyncpa [#allocation3], 0  ;;  %s596_s0 = inlined_call_operand.hbm [shape: f32[16,128], index: 0, kind: input, shape index: {}, may-alias: {0,1,2,3}]   ;;  %s597_s1 = inlined_call_operand.hbm [shape: f32[16,128], index: 1, kind: input, shape index: {}, may-alias: {0,1,2,3}]   ;;  %s598_s2 = inlined_call_operand.hbm [shape: f32[16,128], index: 2, kind: input, shape index: {}, may-alias: {0,1,2,3}]   ;;  %s599_s3 = inlined_call_operand.hbm [shape: f32[16,128], index: 3, kind: input, shape index: {}, may-alias: {0,1,2,3}]   ;;  %s600_s4 = inlined_call_operand.hbm [shape: f32[1,1,1], index: 4, kind: output, shape index: {0}]   ;;  %s601_s5 = inlined_call_operand.hbm [shape: f32[1,1,1], index: 5, kind: output, shape index: {1}]   ;;  %s602_s6 = inlined_call_operand.hbm [shape: f32[1,1,1], index: 6, kind: output, shape index: {2}]  }
   0x1   :  { %13 = vsyncpa [#allocation6], 0 }
   0x2   :  { %14 = vsyncpa [#allocation9], 0 }
   0x3   :  { %15 = vsyncpa [#allocation4], 0  ;;  %s253_s23 = scalar_lea.hbm %s597_s1, 128 }
   0x4   :  { %16 = vsyncpa [#allocation12], 0  ;;  %s446_s24 = smov [#allocation5]   ;;  %s447_s26 = smov [#allocation2]  }
   0x5   :  { %s40_s25 = sshll.u32 %s446_s24, 4  ;;  %s26_s27 = sshll.u32 %s447_s26, 4  ;;  %s41_s25 = int_to_ptr.vmem [resolvable:$true] %s40_s25  ;;  %s27_s27 = int_to_ptr.vmem [resolvable:$true] %s26_s27 }
   0x6   :  { %s300_s30 = scalar_lea.hbm %s597_s1, 256  ;;  %p279_p1 = scmp.lt.u32.totalorder %s253_s23, %s597_s1 }
   0x7   :  { %p277_p0 = scmp.ne.s32.totalorder %s253_s23, %s300_s30  ;;  %p280_p2 = scmp.lt.u32.totalorder %s300_s30, %s300_s30 }
   0x8   :  { %p282_p4 = scmp.lt.u32.totalorder %s300_s30, %s253_s23 }
   0x9   :  { %p281_p3 = por %p280_p2, %p279_p1 }
   0xb   :  { %p283_p5 = por %p282_p4, %p281_p3 }
   0xd   :  { %p284_p6 = pnand %p283_p5, %p277_p0 }
   0xf   :  { %287 = shalt.err (!%p284_p6)
}
  0x10   :  { %s288_s9 = scalar_lea.vmem %s41_s25, 128  ;;  %p293_p8 = scmp.lt.s32.totalorder %s41_s25, %s41_s25 }
  0x11   :  { %p289_p7 = scmp.ne.s32.totalorder %s41_s25, %s288_s9  ;;  %p294_p9 = scmp.lt.s32.totalorder %s288_s9, %s288_s9 }
  0x13   :  { %p295_p10 = por %p294_p9, %p293_p8 }
  0x15   :  { %p296_p11 = pnand %p295_p10, %p289_p7 }
  0x17   :  { %299 = shalt.err (!%p296_p11)
}
  0x18   :  { %43 = dma.hbm_to_vmem [thread:$0]  %s253_s23, 128, %s41_s25, [#allocation6]  }
  0x19   :  { %s301_s12 = scalar_lea.hbm %s596_s0, 128  ;;  %s303_s16 = scalar_lea.hbm %s596_s0, 256 }
  0x1a   :  { %p302_p12 = scmp.ne.s32.totalorder %s596_s0, %s301_s12  ;;  %p304_p13 = scmp.lt.u32.totalorder %s303_s16, %s301_s12 }
  0x1b   :  { %p305_p0 = scmp.lt.u32.totalorder %s301_s12, %s596_s0 }
  0x1d   :  { %p306_p1 = por %p305_p0, %p304_p13 }
  0x1f   :  { %p307_p2 = pnand %p306_p1, %p302_p12 }
  0x21   :  { %310 = shalt.err (!%p307_p2)
}
  0x22   :  { %s311_s19 = scalar_lea.vmem %s27_s27, 128  ;;  %p316_p4 = scmp.lt.s32.totalorder %s27_s27, %s27_s27 }
  0x23   :  { %p312_p3 = scmp.ne.s32.totalorder %s27_s27, %s311_s19  ;;  %p317_p5 = scmp.lt.s32.totalorder %s311_s19, %s311_s19 }
  0x25   :  { %p318_p6 = por %p317_p5, %p316_p4 }
  0x27   :  { %p319_p7 = pnand %p318_p6, %p312_p3 }
  0x29   :  { %322 = shalt.err (!%p319_p7)
}
  0x2a   :  { %29 = dma.hbm_to_vmem [thread:$0]  %s596_s0, 128, %s27_s27, [#allocation3]  }
  0x2b   :  { %s448_s22 = smov [#allocation7]   ;;  %s516_s26 = scalar_lea.hbm %s599_s3, 128 }
  0x2c   :  { %s50_s23 = sshll.u32 %s448_s22, 4  ;;  %s323_s30 = scalar_lea.hbm %s598_s2, 128  ;;  %s51_s23 = int_to_ptr.vmem [resolvable:$true] %s50_s23 }
  0x2d   :  { %p324_p8 = scmp.ne.s32.totalorder %s598_s2, %s323_s30  ;;  %s325_s0 = scalar_lea.hbm %s598_s2, 256 }
  0x2e   :  { %p326_p9 = scmp.lt.u32.totalorder %s325_s0, %s323_s30  ;;  %p327_p10 = scmp.lt.u32.totalorder %s323_s30, %s598_s2 }
  0x30   :  { %p328_p11 = por %p327_p10, %p326_p9 }
  0x32   :  { %p329_p12 = pnand %p328_p11, %p324_p8 }
  0x34   :  { %332 = shalt.err (!%p329_p12)
}
  0x35   :  { %s333_s12 = scalar_lea.vmem %s51_s23, 128  ;;  %p338_p0 = scmp.lt.s32.totalorder %s51_s23, %s51_s23 }
  0x36   :  { %p334_p13 = scmp.ne.s32.totalorder %s51_s23, %s333_s12  ;;  %p339_p1 = scmp.lt.s32.totalorder %s333_s12, %s333_s12 }
  0x38   :  { %p340_p2 = por %p339_p1, %p338_p0 }
  0x3a   :  { %p341_p3 = pnand %p340_p2, %p334_p13 }
  0x3c   :  { %344 = shalt.err (!%p341_p3)
}
  0x3d   :  { %53 = dma.hbm_to_vmem [thread:$0]  %s598_s2, 128, %s51_s23, [#allocation6]  }
  0x3e   :  { %s449_s14 = smov [#allocation8]   ;;  %s369_s18 = scalar_lea.hbm %s599_s3, 256 }
  0x3f   :  { %s61_s15 = sshll.u32 %s449_s14, 4  ;;  %p346_p4 = scmp.ne.s32.totalorder %s516_s26, %s369_s18  ;;  %s62_s15 = int_to_ptr.vmem [resolvable:$true] %s61_s15 }
  0x40   :  { %p348_p5 = scmp.lt.u32.totalorder %s516_s26, %s599_s3  ;;  %p349_p6 = scmp.lt.u32.totalorder %s369_s18, %s369_s18 }
  0x41   :  { %p351_p8 = scmp.lt.u32.totalorder %s369_s18, %s516_s26 }
  0x42   :  { %p350_p7 = por %p349_p6, %p348_p5 }
  0x44   :  { %p352_p9 = por %p351_p8, %p350_p7 }
  0x46   :  { %p353_p10 = pnand %p352_p9, %p346_p4 }
  0x48   :  { %356 = shalt.err (!%p353_p10)
}
  0x49   :  { %s357_s21 = scalar_lea.vmem %s62_s15, 128  ;;  %p362_p12 = scmp.lt.s32.totalorder %s62_s15, %s62_s15 }
  0x4a   :  { %p358_p11 = scmp.ne.s32.totalorder %s62_s15, %s357_s21  ;;  %p363_p13 = scmp.lt.s32.totalorder %s357_s21, %s357_s21 }
  0x4c   :  { %p364_p0 = por %p363_p13, %p362_p12 }
  0x4e   :  { %p365_p1 = pnand %p364_p0, %p358_p11 }
  0x50   :  { %368 = shalt.err (!%p365_p1)
}
  0x51   :  { %64 = dma.hbm_to_vmem [thread:$0]  %s516_s26, 128, %s62_s15, [#allocation9]  }
  0x52   :  { %436 = dma.done.wait [#allocation3], 128  }
  0x53   :  { %437 = vsyncadd [#allocation3], 4294967168 }
  0x54   :  { %438 = dma.done.wait [#allocation6], 256  }
  0x55   :  { %439 = vsyncadd [#allocation6], 4294967040 }
  0x56   :  { %440 = dma.done.wait [#allocation9], 128  }
  0x57   :  { %441 = vsyncadd [#allocation9], 4294967168  ;;  %v89_v0 = vld [vmem:[#allocation2] sm:$0xff]  ;;  %v91_v1 = vld [vmem:[#allocation7] sm:$0x1]  ;;  %vm127_vm0 = vcmask 1047559   ;;  %v140_v28 = vlaneseq }
  0x58   :  { %v90_v2 = vld [vmem:[#allocation5] sm:$0xff]  ;;  %v122_v3 = vrot.slane %v91_v1, 1  ;;  %v92_v5 = vld [vmem:[#allocation8] sm:$0x1]  ;;  %v104_v6 = vrot.slane %v89_v0, 1  ;;  %vm166_vm2 = vcmask 7168  }
  0x59   :  { %v103_v4 = vrot.slane %v90_v2, 1  ;;  %v132_v7 = vrot.slane %v92_v5, 1  ;;  %v98_v15 = vsub.f32 %v90_v2, %v89_v0  ;;  %v93_v17 = vsub.f32 %v89_v0, %v90_v2  ;;  %s451_s2 = smov [#allocation10]  }
  0x5a   :  { %v124_v8 = vsub.f32 %v89_v0, %v122_v3  ;;  %v110_v10 = vsub.f32 %v90_v2, %v104_v6  ;;  %v141_v29 = vshrl.u32 %v140_v28, 7  ;;  %vm85_vm3 = vcmask 0   ;;  %s215_s3 = sshll.u32 %s451_s2, 4  ;;  %s216_s3 = int_to_ptr.vmem [resolvable:$true] %s215_s3 }
  0x5b   :  { %v105_v9 = vsub.f32 %v89_v0, %v103_v4  ;;  %v134_v11 = vsub.f32 %v90_v2, %v132_v7  ;;  %v99_v23 = vadd.f32 1e-06, %v98_v15  ;;  %v94_v24 = vadd.f32 1e-06, %v93_v17  ;;  %s370_s23 = scalar_lea.vmem %s216_s3, 16  ;;  %s374_s24 = scalar_lea.vmem %s216_s3, 32 }
  0x5c   :  { %v125_v12 = vadd.f32 1e-06, %v124_v8  ;;  %v111_v14 = vadd.f32 1e-06, %v110_v10  ;;  %v145_v30 = vsub.s32 7, %v141_v29  ;;  %vm142_vm1 = vcmp.eq.s32.totalorder %v141_v29, 7  ;;  %p371_p2 = scmp.ne.s32.totalorder %s216_s3, %s370_s23  ;;  %p375_p3 = scmp.lt.s32.totalorder %s216_s3, %s216_s3 }
  0x5d   :  { %v106_v13 = vadd.f32 1e-06, %v105_v9  ;;  %v135_v16 = vadd.f32 1e-06, %v134_v11  ;;  %v100_v26 = vmul.f32 %v99_v23, %v99_v23  ;;  %v95_v27 = vmul.f32 %v94_v24, %v94_v24  ;;  %p376_p4 = scmp.lt.s32.totalorder %s374_s24, %s370_s23 }
  0x5e   :  { %v126_v18 = vmul.f32 %v125_v12, %v125_v12  ;;  %v112_v22 = vmul.f32 %v111_v14, %v111_v14  ;;  %v450_v56 = vmov 0.0  }
  0x5f   :  { %v107_v19 = vmul.f32 %v106_v13, %v106_v13  ;;  %v136_v20 = vmul.f32 %v135_v16, %v135_v16  ;;  %86 = vst.msk [vmem:[#allocation10] sm:$0x1] %vm85_vm3, %v450_v56  ;;  %87 = vst.msk [vmem:[#allocation11] sm:$0x1] %vm85_vm3, %v450_v56  ;;  %p377_p5 = por %p376_p4, %p375_p3 }
  0x60   :  { %v128_v21 = vsel %vm127_vm0, %v126_v18, 0.0  ;;  %88 = vst.msk [vmem:[#allocation13] sm:$0x1] %vm85_vm3, %v450_v56 }
  0x61   :  { %108 = vadd.xlane.f32.xlu1 %v107_v19  ;;  %129 = vadd.xlane.f32.xlu0 %v128_v21  ;;  %v137_v25 = vsel %vm127_vm0, %v136_v20, 0.0  ;;  %p378_p6 = pnand %p377_p5, %p371_p2 }
  0x65   :  { %113 = vadd.xlane.f32.xlu1 %v112_v22  ;;  %138 = vadd.xlane.f32.xlu0 %v137_v25 }
  0x66   :  { %v165_v14 = vld [vmem:[#allocation10] sm:$0x1] }
  0x69   :  { %101 = vadd.xlane.f32.xlu1 %v100_v26  ;;  %96 = vadd.xlane.f32.xlu0 %v95_v27 }
  0xee   :  { %v109_v31 = vpop.xlane.xlu1 %108  ;;  %v130_v32 = vpop.xlane.xlu0 %129 }
  0xef   :  { %v146_v33 = vrot.slane %v130_v32, %v145_v30 }
  0xf1   :  { %v147_v34 = vsel %vm142_vm1, %v146_v33, %v109_v31 }
  0xf2   :  { %v114_v35 = vpop.xlane.xlu1 %113  ;;  %v139_v36 = vpop.xlane.xlu0 %138  ;;  %v159_v37 = vmul.f32 1.442695, %v147_v34 }
  0xf3   :  { %v151_v38 = vrot.slane %v139_v36, %v145_v30 }
  0xf4   :  { %268 = vpow2.f32 %v159_v37 }
  0xf5   :  { %v152_v39 = vsel %vm142_vm1, %v151_v38, %v114_v35 }
  0xf6   :  { %v102_v40 = vpop.xlane.xlu1 %101  ;;  %v161_v41 = vmul.f32 1.442695, %v152_v39  ;;  %v97_v43 = vpop.xlane.xlu0 %96 }
  0xf7   :  { %v156_v42 = vmul.f32 1.442695, %v102_v40  ;;  %v153_v44 = vadd.f32 %v102_v40, %v97_v43  ;;  %v154_v45 = vmul.f32 1.442695, %v97_v43 }
  0xf8   :  { %270 = vpow2.f32 %v161_v41 }
  0xf9   :  { %272 = vpow2.f32 %v156_v42  ;;  %v167_v46 = vsel %vm166_vm2, %v153_v44, 0.0 }
  0xfa   :  { %274 = vpow2.f32 %v154_v45  ;;  %168 = vadd.xlane.f32.xlu0 %v167_v46 }
  0xfe   :  { %v269_v47 = vpop.eup %268 }
 0x102   :  { %v271_v48 = vpop.eup %270 }
 0x103   :  { %v273_v49 = vpop.eup %272  ;;  %v163_v50 = vadd.f32 %v271_v48, %v269_v47 }
 0x104   :  { %v275_v51 = vpop.eup %274 }
 0x105   :  { %v158_v52 = vadd.f32 %v275_v51, %v273_v49  ;;  %v164_v53 = vsub.f32 0.0, %v163_v50 }
 0x107   :  { %v182_v54 = vsel %vm166_vm2, %v158_v52, 0.0  ;;  %v196_v55 = vsel %vm166_vm2, %v164_v53, 0.0 }
 0x108   :  { %183 = vadd.xlane.f32.xlu1 %v182_v54  ;;  %197 = vadd.xlane.f32.xlu0 %v196_v55 }
 0x187   :  { %v169_v57 = vpop.xlane.xlu0 %168 }
 0x188   :  { %v170_v58 = vrot.slane %v169_v57, 4 }
 0x18a   :  { %v171_v59 = vadd.f32 %v170_v58, %v169_v57 }
 0x18c   :  { %v172_v60 = vrot.slane %v171_v59, 2 }
 0x18e   :  { %v173_v61 = vadd.f32 %v172_v60, %v171_v59 }
 0x190   :  { %v174_v62 = vrot.slane %v173_v61, 1 }
 0x192   :  { %v175_v63 = vadd.f32 %v174_v62, %v173_v61 }
 0x194   :  { %254 = vpush %v175_v63 }
 0x195   :  { %v184_v0 = vpop.xlane.xlu1 %183  ;;  %v198_v1 = vpop.xlane.xlu0 %197 }
 0x196   :  { %v185_v2 = vrot.slane %v184_v0, 4  ;;  %v199_v3 = vrot.slane %v198_v1, 4 }
 0x198   :  { %v186_v4 = vadd.f32 %v185_v2, %v184_v0  ;;  %v200_v5 = vadd.f32 %v199_v3, %v198_v1 }
 0x19a   :  { %v187_v6 = vrot.slane %v186_v4, 2  ;;  %v201_v7 = vrot.slane %v200_v5, 2 }
 0x19c   :  { %v188_v8 = vadd.f32 %v187_v6, %v186_v4  ;;  %v202_v9 = vadd.f32 %v201_v7, %v200_v5 }
 0x19e   :  { %v189_v10 = vrot.slane %v188_v8, 1  ;;  %v203_v11 = vrot.slane %v202_v9, 1 }
 0x1a0   :  { %v190_v12 = vadd.f32 %v189_v10, %v188_v8  ;;  %v204_v13 = vadd.f32 %v203_v11, %v202_v9 }
 0x1a2   :  { %256 = vpush %v190_v12 }
 0x1a3   :  { %258 = vpush %v204_v13 }
 0x1c5   :  { %s255_s22 = spop %254 }
 0x1c6   :  { %v177_v15 = vstv %s255_s22 }
 0x1c7   :  { %v178_v16 = vadd.f32 %v177_v15, %v165_v14 }
 0x1c9   :  { %180 = vst.msk [vmem:[#allocation10] sm:$0x1] %vm85_vm3, %v178_v16 }
 0x1ca   :  { %381 = shalt.err (!%p378_p6)
}
 0x1cb   :  { %s382_s28 = scalar_lea.hbm %s600_s4, 16 }
 0x1cc   :  { %p383_p7 = scmp.ne.s32.totalorder %s600_s4, %s382_s28  ;;  %p386_p8 = scmp.lt.u32.totalorder %s382_s28, %s600_s4 }
 0x1ce   :  { %p388_p9 = pnand %p386_p8, %p383_p7 }
 0x1d0   :  { %391 = shalt.err (!%p388_p9)
}
 0x1d1   :  { %218 = dma.vmem_to_hbm [thread:$0]  %s216_s3, 16, %s600_s4, [#allocation4]   ;;  %v181_v17 = vld [vmem:[#allocation11] sm:$0x1]  ;;  %v195_v18 = vld [vmem:[#allocation13] sm:$0x1] }
 0x1d2   :  { %s452_s0 = smov [#allocation11]   ;;  %s453_s12 = smov [#allocation13]  }
 0x1d3   :  { %s225_s27 = sshll.u32 %s452_s0, 4  ;;  %s257_s11 = spop %256  ;;  %s226_s27 = int_to_ptr.vmem [resolvable:$true] %s225_s27 }
 0x1d4   :  { %s235_s1 = sshll.u32 %s453_s12, 4  ;;  %v192_v19 = vstv %s257_s11  ;;  %s259_s13 = spop %258  ;;  %s562_s1 = int_to_ptr.vmem [resolvable:$true] %s235_s1 }
 0x1d5   :  { %v193_v20 = vadd.f32 %v192_v19, %v181_v17  ;;  %v206_v21 = vstv %s259_s13  ;;  %s392_s4 = scalar_lea.vmem %s226_s27, 16  ;;  %s396_s14 = scalar_lea.vmem %s226_s27, 32 }
 0x1d6   :  { %v207_v22 = vadd.f32 %v206_v21, %v195_v18  ;;  %p393_p10 = scmp.ne.s32.totalorder %s226_s27, %s392_s4  ;;  %p397_p11 = scmp.lt.s32.totalorder %s226_s27, %s226_s27 }
 0x1d7   :  { %194 = vst.msk [vmem:[#allocation11] sm:$0x1] %vm85_vm3, %v193_v20  ;;  %p398_p12 = scmp.lt.s32.totalorder %s396_s14, %s392_s4 }
 0x1d8   :  { %208 = vst.msk [vmem:[#allocation13] sm:$0x1] %vm85_vm3, %v207_v22 }
 0x1d9   :  { %p399_p13 = por %p398_p12, %p397_p11 }
 0x1db   :  { %p400_p0 = pnand %p399_p13, %p393_p10 }
 0x1dd   :  { %403 = shalt.err (!%p400_p0)
}
 0x1de   :  { %s404_s17 = scalar_lea.hbm %s601_s5, 16 }
 0x1df   :  { %p405_p1 = scmp.ne.s32.totalorder %s601_s5, %s404_s17  ;;  %p408_p2 = scmp.lt.u32.totalorder %s404_s17, %s601_s5 }
 0x1e1   :  { %p410_p3 = pnand %p408_p2, %p405_p1 }
 0x1e3   :  { %413 = shalt.err (!%p410_p3)
}
 0x1e4   :  { %228 = dma.vmem_to_hbm [thread:$0]  %s226_s27, 16, %s601_s5, [#allocation12]  }
 0x1e5   :  { %s414_s22 = scalar_lea.vmem %s562_s1, 16  ;;  %s418_s23 = scalar_lea.vmem %s562_s1, 32 }
 0x1e6   :  { %p415_p4 = scmp.ne.s32.totalorder %s562_s1, %s414_s22  ;;  %p419_p5 = scmp.lt.s32.totalorder %s562_s1, %s562_s1 }
 0x1e7   :  { %p420_p6 = scmp.lt.s32.totalorder %s418_s23, %s414_s22 }
 0x1e9   :  { %p421_p7 = por %p420_p6, %p419_p5 }
 0x1eb   :  { %p422_p8 = pnand %p421_p7, %p415_p4 }
 0x1ed   :  { %425 = shalt.err (!%p422_p8)
}
 0x1ee   :  { %s426_s26 = scalar_lea.hbm %s602_s6, 16 }
 0x1ef   :  { %p427_p9 = scmp.ne.s32.totalorder %s602_s6, %s426_s26  ;;  %p430_p10 = scmp.lt.u32.totalorder %s426_s26, %s602_s6 }
 0x1f1   :  { %p432_p11 = pnand %p430_p10, %p427_p9 }
 0x1f3   :  { %435 = shalt.err (!%p432_p11)
}
 0x1f4   :  { %238 = dma.vmem_to_hbm [thread:$0]  %s562_s1, 16, %s602_s6, [#allocation12]  }
 0x1f5   :  { %442 = dma.done.wait [#allocation4], 16  }
 0x1f6   :  { %443 = vsyncadd [#allocation4], 4294967280 }
 0x1f7   :  { %444 = dma.done.wait [#allocation12], 32  }
 0x1f8   :  { %445 = vsyncadd [#allocation12], 4294967264 }
 0x1f9   :  { %248 = vsyncpa [#allocation3], 1 }
 0x1fa   :  { %249 = vsyncpa [#allocation6], 1 }
 0x1fb   :  { %250 = vsyncpa [#allocation9], 1 }
 0x1fc   :  { %251 = vsyncpa [#allocation4], 1 }
 0x1fd   :  { %252 = vsyncpa [#allocation12], 1 }

</bundles_post_ra>
